<compile_context>
chip_gen: v7x
topology: tpu7x:2x2x1
jax: 0.10.0
libtpu: 0.0.40
codegen_flags: <defaults>
</compile_context>

<pallas_src>
import functools

import jax
import jax.numpy as jnp
from jax import lax
from jax.experimental import pallas as pl
from jax.experimental.pallas import tpu as pltpu


def _round_up(x, m):
    return (x + m - 1) // m * m


def _onehot_gather_kernel(idx_ref, tab_ref, out_ref, *, num_rows, mask_rows):
    # idx_ref: (1, TB)  int32   publisher indices for this batch tile
    # tab_ref: (TP, D)  float32 one P-chunk of the embedding table
    # out_ref: (D, TB)  float32 transposed output tile (acts as accumulator)
    j = pl.program_id(1)                  # P-chunk index ("arbitrary" axis)
    tp = tab_ref.shape[0]
    tb = idx_ref.shape[1]

    @pl.when(j == 0)
    def _():
        out_ref[...] = jnp.zeros_like(out_ref)

    p0 = j * tp
    # one-hot^T: (TP, TB); element (p, b) = 1.0 iff idx[b] == global row p.
    rows = lax.broadcasted_iota(jnp.int32, (tp, tb), 0) + p0
    onehot_t = (rows == idx_ref[...]).astype(tab_ref.dtype)

    tab = tab_ref[...]
    if mask_rows:
        # Last chunk may extend past P; zero out-of-range rows so any garbage
        # in the padded part of the block cannot produce NaN * 0.
        row_col = lax.broadcasted_iota(jnp.int32, (tp, 1), 0) + p0
        tab = jnp.where(row_col < num_rows, tab, jnp.zeros_like(tab))

    # out^T += table_chunk^T @ onehot^T   (contraction over TP on the MXU)
    out_ref[...] += lax.dot_general(
        tab,
        onehot_t,
        dimension_numbers=(((0,), (0,)), ((), ())),
        preferred_element_type=jnp.float32,
    )


def item_embedding_db_forward(item_fea, emb_table, *, block_b=256, block_p=2048):
    """item_fea: [B, F] int, emb_table: [P, D] float32 -> [B, D] float32."""
    publisher_idx = item_fea[:, 0].astype(jnp.int32)
    P, D = emb_table.shape
    B = publisher_idx.shape[0]

    # PyTorch nn.Embedding raises on out-of-range indices; we clamp instead.
    publisher_idx = jnp.clip(publisher_idx, 0, P - 1)

    table_bytes = P * D * jnp.dtype(emb_table.dtype).itemsize
    out_bytes = B * D * 4
    # Roofline gate: the one-hot kernel streams the whole table from HBM while
    # a plain gather only touches ~B*D*4 bytes.  Worst on v5e / tiny batches.
    # TODO(synk): streamed row-DMA gather kernel to remove this fallback.
    if table_bytes > max(32 * out_bytes, 4 * 2**20):
        return jnp.take(emb_table, publisher_idx, axis=0)

    # ---- batch tile: becomes the lane axis of the transposed output ----
    b_pad8 = _round_up(B, 8)
    if b_pad8 <= 128:
        tb = b_pad8                          # single tile; lane dim == full dim
    elif b_pad8 < 2 * block_b:
        tb = 128                             # >=2 parallel steps for v7x's 2 TCs
    else:
        tb = _round_up(block_b, 128)         # fill the 256-wide MXU (v6e/v7x)
    b_pad = _round_up(B, tb)
    idx_2d = jnp.pad(publisher_idx, (0, b_pad - B)).reshape(1, b_pad)

    # ---- P chunk: contraction tile (bounds the one-hot temp & table buffer) ----
    if P <= block_p:
        tp, mask_rows = P, False
    else:
        tp = _round_up(block_p, 8)
        mask_rows = (P % tp) != 0
    n_p = (P + tp - 1) // tp

    grid = (b_pad // tb, n_p)

    # Generation-aware VMEM budget (v5e/v6e: 128 MiB -> 96; v7x: 64 -> 48).
    try:
        vmem_cap = int(pltpu.get_tpu_info().vmem_capacity_bytes)
    except Exception:
        vmem_cap = 64 * 2**20
    vmem_limit = int(min(96 * 2**20, (vmem_cap * 3) // 4))

    kernel = functools.partial(
        _onehot_gather_kernel, num_rows=P, mask_rows=mask_rows
    )

    out_t = pl.pallas_call(
        kernel,
        out_shape=jax.ShapeDtypeStruct((D, b_pad), jnp.float32),
        grid_spec=pltpu.PrefetchScalarGridSpec(
            num_scalar_prefetch=0,
            grid=grid,
            in_specs=[
                pl.BlockSpec((1, tb), lambda i, j: (0, i)),    # index tile
                pl.BlockSpec((tp, D), lambda i, j: (j, 0)),    # table P-chunk
            ],
            out_specs=pl.BlockSpec((D, tb), lambda i, j: (0, i)),  # out^T tile
        ),
        compiler_params=pltpu.CompilerParams(
            dimension_semantics=("parallel", "arbitrary"),
            vmem_limit_bytes=vmem_limit,
        ),
        cost_estimate=pl.CostEstimate(
            flops=2 * b_pad * (n_p * tp) * D,
            transcendentals=0,
            bytes_accessed=table_bytes + b_pad * 4 + b_pad * D * 4,
        ),
    )(idx_2d, emb_table)

    return out_t[:, :B].T.astype(emb_table.dtype)


def _run_case(num_publisher, embedding_dim, batch, block_p, key):
    k_emb, k_idx = jax.random.split(key)
    emb_table = jax.random.normal(
        k_emb, (num_publisher, embedding_dim), dtype=jnp.float32
    )
    item_fea = jax.random.randint(
        k_idx, (batch, 4), minval=0, maxval=num_publisher, dtype=jnp.int32
    )
    fwd = jax.jit(functools.partial(item_embedding_db_forward, block_p=block_p))
    out = jax.block_until_ready(fwd(item_fea, emb_table))
    ref = jnp.take(emb_table, item_fea[:, 0], axis=0)
    assert out.shape == (batch, embedding_dim)
    assert out.dtype == jnp.float32
    assert bool(jnp.allclose(out, ref)), (
        f"mismatch vs reference gather (P={num_publisher}, D={embedding_dim}, "
        f"B={batch}, block_p={block_p})"
    )


if __name__ == "__main__":
    key = jax.random.PRNGKey(0)
    k1, k2, k3 = jax.random.split(key, 3)

    # 1) config-like sizes: single P chunk, 2 batch steps of TB=128.
    _run_case(num_publisher=64, embedding_dim=32, batch=256, block_p=2048, key=k1)
    # 2) multi-chunk contraction (P divides evenly into chunks).
    _run_case(num_publisher=96, embedding_dim=32, batch=256, block_p=32, key=k2)
    # 3) partial last chunk (in-kernel row masking) + padded batch tile.
    _run_case(num_publisher=80, embedding_dim=32, batch=200, block_p=32, key=k3)

    print("KERNEL_OK")
</pallas_src>

<mosaic_0001>
module attributes {stable_mosaic.version = 11 : i64} {
  func.func @_onehot_gather_kernel(%arg0: i32, %arg1: i32, %arg2: memref<1x128xi32, #tpu.memory_space<vmem>>, %arg3: memref<64x32xf32, #tpu.memory_space<vmem>>, %arg4: memref<32x128xf32, #tpu.memory_space<vmem>>) attributes {dimension_semantics = [#tpu.dimension_semantics<parallel>, #tpu.dimension_semantics<arbitrary>], iteration_bounds = array<i64: 2, 1>, scalar_prefetch = 0 : i64, scratch_operands = 0 : i64, tpu.core_type = #tpu.core_type<tc>, window_params = [{transform_indices = @transform_0, window_bounds = array<i64: 1, 128>}, {transform_indices = @transform_1, window_bounds = array<i64: 64, 32>}, {transform_indices = @transform_2, window_bounds = array<i64: 32, 128>}]} {
    %c0_i32 = arith.constant 0 : i32
    %0 = arith.cmpi eq, %arg1, %c0_i32 : i32
    %1 = arith.extui %0 : i1 to i32
    %c0_i32_0 = arith.constant 0 : i32
    %2 = arith.cmpi ne, %1, %c0_i32_0 : i32
    scf.if %2 {
      %cst_8 = arith.constant 0.000000e+00 : f32
      %17 = vector.broadcast %cst_8 : f32 to vector<32x128xf32>
      %c0_9 = arith.constant 0 : index
      %c0_10 = arith.constant 0 : index
      %18 = vector.load %arg4[%c0_9, %c0_10] : memref<32x128xf32, #tpu.memory_space<vmem>>, vector<32x128xf32>
      tpu.vector_store %arg4[%c0_9, %c0_10], %17 {strides = array<i32>} : memref<32x128xf32, #tpu.memory_space<vmem>>, vector<32x128xf32>,
    } else {
    }
    %c64_i32 = arith.constant 64 : i32
    %3 = arith.muli %arg1, %c64_i32 : i32
    %4 = tpu.iota {dimensions = array<i32: 0>} : vector<64x128xi32>
    %5 = vector.broadcast %3 : i32 to vector<64x128xi32>
    %6 = arith.addi %4, %5 : vector<64x128xi32>
    %c0 = arith.constant 0 : index
    %c0_1 = arith.constant 0 : index
    %7 = vector.load %arg2[%c0, %c0_1] : memref<1x128xi32, #tpu.memory_space<vmem>>, vector<1x128xi32>
    %8 = vector.broadcast %7 : vector<1x128xi32> to vector<64x128xi32>
    %9 = arith.cmpi eq, %6, %8 : vector<64x128xi32>
    %10 = arith.extui %9 : vector<64x128xi1> to vector<64x128xi32>
    %11 = arith.sitofp %10 : vector<64x128xi32> to vector<64x128xf32>
    %c0_2 = arith.constant 0 : index
    %c0_3 = arith.constant 0 : index
    %12 = vector.load %arg3[%c0_2, %c0_3] : memref<64x32xf32, #tpu.memory_space<vmem>>, vector<64x32xf32>
    %c0_4 = arith.constant 0 : index
    %c0_5 = arith.constant 0 : index
    %13 = vector.load %arg4[%c0_4, %c0_5] : memref<32x128xf32, #tpu.memory_space<vmem>>, vector<32x128xf32>
    %cst = arith.constant dense<0.000000e+00> : vector<32x128xf32>
    %14 = tpu.matmul %12, %11, %cst {dimension_numbers = #tpu.dot_dimension_numbers<[0], [0], [1], [1], [0, 1, 1, 1], [], []>} : vector<64x32xf32>, vector<64x128xf32>, vector<32x128xf32> -> vector<32x128xf32>
    %15 = arith.addf %13, %14 : vector<32x128xf32>
    %c0_6 = arith.constant 0 : index
    %c0_7 = arith.constant 0 : index
    %16 = vector.load %arg4[%c0_6, %c0_7] : memref<32x128xf32, #tpu.memory_space<vmem>>, vector<32x128xf32>
    tpu.vector_store %arg4[%c0_6, %c0_7], %15 {strides = array<i32>} : memref<32x128xf32, #tpu.memory_space<vmem>>, vector<32x128xf32>,
    return
  }
  func.func @transform_0(%arg0: i32, %arg1: i32) -> (i32, i32) {
    %c0_i32 = arith.constant 0 : i32
    %c0_i32_0 = arith.constant 0 : i32
    return %c0_i32, %arg0 : i32, i32
  }
  func.func @transform_1(%arg0: i32, %arg1: i32) -> (i32, i32) {
    %c0_i32 = arith.constant 0 : i32
    %c0_i32_0 = arith.constant 0 : i32
    return %arg1, %c0_i32 : i32, i32
  }
  func.func @transform_2(%arg0: i32, %arg1: i32) -> (i32, i32) {
    %c0_i32 = arith.constant 0 : i32
    %c0_i32_0 = arith.constant 0 : i32
    return %c0_i32, %arg0 : i32, i32
  }
}

</mosaic_0001>

<bundles_post_ra>
// kernel: item_embedding_db_forward.1
= control target key start
LH: loop header
LB: loop body
LE: loop exit
PB: predicated region body
PF: predicated region fallthrough
CT: control target
= control target key end

     0   :  { %7 = vsyncpa [#allocation3], 0  ;;  %s872_s0 = inlined_call_operand.vmem [shape: s32[1,256], index: 0, kind: input, shape index: {}]   ;;  %s873_s1 = inlined_call_operand.vmem [shape: f32[64,32], index: 1, kind: input, shape index: {}]   ;;  %s874_s2 = inlined_call_operand.hbm [shape: f32[32,256], index: 2, kind: output, shape index: {}]  }
   0x1   :  { %9 = vsyncpa [#allocation3 + $0x1], 0  ;;  %s721_s9 = smov 0   ;;  %s723_s10 = smov 0  }
   0x2   :  { %s725_s11 = smov 0   ;;  %s727_s12 = smov 0  }
   0x3   :  { %s729_s13 = smov 0   ;;  %s731_s14 = smov 0  }
   0x4 LB: > { %s471_s15 = sadd.s32 4294967295, %s699_s14   ;;  %s472_s16 = sadd.s32 4294967294, %s699_s14   ;;  %s699_s14 = sphi %s731_s14, %s15_s14   ;;  %s695_s13 = sphi %s729_s13, %s883_s13   ;;  %s691_s12 = sphi %s727_s12, %s882_s12   ;;  %s687_s11 = sphi %s725_s11, %s881_s11   ;;  %s683_s10 = sphi %s723_s10, %s880_s10   ;;  %s679_s9 = sphi %s721_s9, %s879_s9  }
   0x5   : > { %s27_s17 = sadd.s32 1, %s695_s13  ;;  %s86_s18 = sadd.s32 1, %s687_s11 }
   0x6   : > { %p29_p0 = scmp.ge.s32.totalorder %s27_s17, 2  ;;  %p96_p1 = scmp.ne.s32.totalorder %s687_s11, %s683_s10 }
   0x7   : > { %p97_p2 = scmp.eq.s32.totalorder %s471_s15, 1  ;;  %p102_p3 = scmp.ne.s32.totalorder %s683_s10, %s679_s9 }
   0x8   : > { %s885_s17 = smov (%p29_p0, %s27_s17), 0  ;;  %p103_p5 = scmp.eq.s32.totalorder %s472_s16, 1 }
   0x9   : > { %p761_p4 = por %p97_p2, %p96_p1  ;;  %s83_s20 = ssub.s32 %s695_s13, %s885_s17 }
   0xa   : > { %p476_p6 = scmp.ge.s32.totalorder %s699_s14, 1  ;;  %p84_p7 = scmp.eq.s32.totalorder %s83_s20, 0 }
   0xb   : > { %p768_p8 = por %p103_p5, %p102_p3  ;;  %p136_p9 = scmp.lt.s32.totalorder %s699_s14, 3 }
   0xc   : > { %s774_s22 = scalar_select %p84_p7, %s687_s11, %s86_s18  }
   0xd   : > { %p137_p10 = pnand %p476_p6, %p136_p9 }
   0xe   : > { %v226_v0 = vld [vmem:[%s873_s1] sm:$0xff] (!%p137_p10)  ;;  %p161_p11 = scmp.lt.s32.totalorder (!%p137_p10), %s691_s12, 1  ;;  %v179_v1 = vlaneseq (!%p137_p10)  ;;  %v227_v2 = vld [vmem:[%s873_s1 + $0x8] sm:$0xff] (!%p137_p10)  ;;  %v228_v10 = vld [vmem:[%s873_s1 + $0x10] sm:$0xff] (!%p137_p10)  ;;  %v701_v11 = vmov (!%p137_p10), 1.0|1.0  }
   0xf   : > { %140 = sbr.rel (%p137_p10) target bundleno = 385 (0x181), region = 28  ;;  %238 = vxpose.xlu0.b32.start [1/8] (short) (narrow) (!%p137_p10), %v226_v0, 32  ;;  %v229_v15 = vld [vmem:[%s873_s1 + $0x18] sm:$0xff] (!%p137_p10)  ;;  %v230_v16 = vld [vmem:[%s873_s1 + $0x20] sm:$0xff] (!%p137_p10)  ;;  %v231_v17 = vld [vmem:[%s873_s1 + $0x28] sm:$0xff] (!%p137_p10)  ;;  %vm270_vm12 = vcmask (!%p137_p10), 523264  }
  0x10   : > { %v180_v3 = vshrl.u32 (!%p137_p10), %v179_v1, 7  ;;  %v232_v18 = vld [vmem:[%s873_s1 + $0x30] sm:$0xff] (!%p137_p10)  ;;  %v233_v19 = vld [vmem:[%s873_s1 + $0x38] sm:$0xff] (!%p137_p10)  ;;  %s158_s25 = sand.u32 (!%p137_p10), 1, %s683_s10   ;;  %s500_s28 = sshll.u32 (!%p137_p10), %s691_s12, 7 }
  0x11   : > { %s477_s26 = sshll.u32 (!%p137_p10), %s158_s25, 5  ;;  %s822_s4 = scalar_lea.hbm (!%p137_p10), %s874_s2, %s500_s28 }
  0x12   : > { %v181_v4 = vadd.s32 (!%p137_p10), 8, %v180_v3  ;;  %v182_v5 = vadd.s32 (!%p137_p10), 16, %v180_v3  ;;  %v183_v6 = vadd.s32 (!%p137_p10), 24, %v180_v3  ;;  %v184_v7 = vadd.s32 (!%p137_p10), 32, %v180_v3  ;;  %s826_s5 = scalar_lea.sflag (!%p137_p10), [#allocation3], %s158_s25 }
  0x13   : > { %239 = vxpose.xlu0.b32.cont [2/8] (short) (narrow) (!%p137_p10), %v227_v2, 32  ;;  %v185_v9 = vadd.s32 (!%p137_p10), 40, %v180_v3  ;;  %v186_v13 = vadd.s32 (!%p137_p10), 48, %v180_v3  ;;  %v187_v14 = vadd.s32 (!%p137_p10), 56, %v180_v3 }
  0x16   : > { %s162_s27 = scalar_select %p161_p11, %s691_s12, 1 }
  0x17   : > { %240 = vxpose.xlu0.b32.cont [3/8] (short) (narrow) %v228_v10, 32  ;;  %s702_s12 = smov [#allocation2]  }
  0x18   : > { %s163_s30 = scalar_lea.vmem %s872_s0, %s162_s27  ;;  %s160_s27 = scalar_lea.vmem [#allocation2], %s477_s26 }
  0x19   : > { %v478_v8 = vld [vmem:[%s163_s30] ss:$0 sm:$0xff]  ;;  %s389_s29 = sshll.u32 %s160_s27, 4  ;;  %s625_s7 = sshll.u32 %s702_s12, 4  ;;  %s824_s29 = int_to_ptr.vmem [resolvable:$true] %s389_s29  ;;  %s626_s7 = int_to_ptr.vmem [resolvable:$false] %s625_s7 }
  0x1a   : > { %vm202_vm0 = vcmp.eq.s32.totalorder %v180_v3, %v478_v8  ;;  %vm203_vm1 = vcmp.eq.s32.totalorder %v181_v4, %v478_v8  ;;  %vm204_vm2 = vcmp.eq.s32.totalorder %v182_v5, %v478_v8  ;;  %vm205_vm3 = vcmp.eq.s32.totalorder %v183_v6, %v478_v8  ;;  %s621_s6 = scalar_lea.vmem %s824_s29, 512  ;;  %s627_s8 = scalar_lea.vmem %s626_s7, 1024 }
  0x1b   : > { %vm537_vm4 = vmpackc.low %vm203_vm1, %vm202_vm0  ;;  %vm206_vm6 = vcmp.eq.s32.totalorder %v184_v7, %v478_v8  ;;  %vm207_vm7 = vcmp.eq.s32.totalorder %v185_v9, %v478_v8  ;;  %vm208_vm9 = vcmp.eq.s32.totalorder %v186_v13, %v478_v8  ;;  %vm209_vm10 = vcmp.eq.s32.totalorder %v187_v14, %v478_v8  ;;  %241 = vxpose.xlu0.b32.cont [4/8] (short) (narrow) %v229_v15, 32  ;;  %p622_p12 = scmp.ne.s32.totalorder %s824_s29, %s621_s6  ;;  %p628_p1 = scmp.lt.s32.totalorder %s824_s29, %s626_s7 }
  0x1c   : > { %538 = vmatprep.subr.msk.bf16.mxu0 %vm537_vm4, %v701_v11  ;;  %vm790_vm5 = vmpackc.low %vm205_vm3, %vm204_vm2  ;;  %553 = vmatprep.subr.msk.bf16.mxu1 %vm537_vm4, %v701_v11  ;;  %p629_p2 = scmp.lt.s32.totalorder %s627_s8, %s621_s6 }
  0x1d   : > { %540 = vmatpush3.bf16.msk.msra.mxu0 %vm537_vm4, %v701_v11  ;;  %557 = vmatpush3.bf16.msk.msra.mxu1 %vm537_vm4, %v701_v11  ;;  %vm545_vm8 = vmpackc.low %vm207_vm7, %vm206_vm6  ;;  %p623_p13 = pnand %p622_p12, %p761_p4 }
  0x1e   : > { %542 = vmatprep.subr.msk.bf16.mxu0 %vm790_vm5, %v701_v11  ;;  %554 = vmatprep.subr.msk.bf16.mxu1 %vm790_vm5, %v701_v11  ;;  %vm549_vm11 = vmpackc.low %vm209_vm10, %vm208_vm9  ;;  %p630_p3 = por %p629_p2, %p628_p1 }
  0x1f   : > { %242 = vxpose.xlu0.b32.cont [5/8] (short) (narrow) %v230_v16, 32  ;;  %p624_p0 = pneg %p623_p13 }
  0x21   : > { %544 = vmatpush3.bf16.msk.msra.mxu0 %vm790_vm5, %v701_v11  ;;  %558 = vmatpush3.bf16.msk.msra.mxu1 %vm790_vm5, %v701_v11  ;;  %p631_p5 = pnand %p630_p3, %p624_p0 }
  0x22   : > { %546 = vmatprep.subr.msk.bf16.mxu0 %vm545_vm8, %v701_v11  ;;  %555 = vmatprep.subr.msk.bf16.mxu1 %vm545_vm8, %v701_v11 }
  0x23   : > { %243 = vxpose.xlu0.b32.cont [6/8] (short) (narrow) %v231_v17, 32 }
  0x25   : > { %548 = vmatpush3.bf16.msk.msra.mxu0 %vm545_vm8, %v701_v11  ;;  %559 = vmatpush3.bf16.msk.msra.mxu1 %vm545_vm8, %v701_v11 }
  0x26   : > { %550 = vmatprep.subr.msk.bf16.mxu0 %vm549_vm11, %v701_v11  ;;  %556 = vmatprep.subr.msk.bf16.mxu1 %vm549_vm11, %v701_v11 }
  0x27   : > { %244 = vxpose.xlu0.b32.cont [7/8] (short) (narrow) %v232_v18, 32 }
  0x29   : > { %552 = vmatpush3.bf16.msk.msra.mxu0 %vm549_vm11, %v701_v11  ;;  %560 = vmatpush3.bf16.msk.msra.mxu1 %vm549_vm11, %v701_v11 }
  0x2b   : > { %245 = vxpose.xlu0.b32.end [8/8] (short) (narrow) %v233_v19, 32 }
  0x8f   : > { %v254_v20 = vpop.trf.xlu0 }
  0x90   : > { %531 = vmatprep.mubr.msk.f32.mxu0 %vm270_vm12, %v254_v20 }
  0x93   : > { %v255_v21 = vpop.trf.xlu0 }
  0x94   : > { %532 = vmatmul.mubr.msk.f32.vlgmr.msra.gmra.mrb[0].mxu0 %vm270_vm12, %v255_v21 }
  0x97   : > { %v256_v22 = vpop.trf.xlu0 }
  0x98   : > { %534 = vmatprep.mubr.msk.f32.mxu1 %vm270_vm12, %v256_v22 }
  0x9b   : > { %v257_v23 = vpop.trf.xlu0 }
  0x9c   : > { %535 = vmatmul.mubr.msk.f32.vlgmr.msra.gmra.mrb[0].mxu1 %vm270_vm12, %v257_v23 }
 0x167   : > { %v533_v24 = vpop.f32.mrb[0].mxu0 }
 0x168   : > { %v349_v25 = vpop.f32.mrb[1].mxu0  ;;  %373 = vst [vmem:[%s160_s27 + $0x8] sm:$0xff] %v533_v24 }
 0x169   : > { %372 = vst [vmem:[%s160_s27] sm:$0xff] %v349_v25 }
 0x16f   : > { %v536_v26 = vpop.f32.mrb[0].mxu1 }
 0x170   : > { %v359_v27 = vpop.f32.mrb[1].mxu1  ;;  %375 = vst [vmem:[%s160_s27 + $0x18] sm:$0xff] %v536_v26 }
 0x171   : > { %374 = vst [vmem:[%s160_s27 + $0x10] sm:$0xff] %v359_v27 }
 0x172   : > { %634 = shalt.err (!%p631_p5)
}
 0x173   : > { %s635_s15 = scalar_lea.hbm %s822_s4, 512  ;;  %s639_s20 = scalar_lea.hbm %s874_s2, 1024 }
 0x174   : > { %p636_p6 = scmp.ne.s32.totalorder %s822_s4, %s635_s15  ;;  %p640_p10 = scmp.lt.u32.totalorder %s822_s4, %s874_s2 }
 0x175   : > { %p641_p11 = scmp.lt.u32.totalorder %s639_s20, %s635_s15  ;;  %p643_p13 = scmp.lt.u32.totalorder %s635_s15, %s822_s4 }
 0x176   : > { %p637_p7 = pnand %p636_p6, %p761_p4 }
 0x177   : > { %p642_p12 = por %p641_p11, %p640_p10 }
 0x178   : > { %p638_p9 = pneg %p637_p7 }
 0x179   : > { %p644_p0 = por %p643_p13, %p642_p12 }
 0x17b   : > { %p645_p1 = pnand %p644_p0, %p638_p9 }
 0x17d   : > { %648 = shalt.err (!%p645_p1)
}
 0x17e   : > { %s703_s25 = smov 128   ;;  %s704_s26 = smov 256  }
 0x17f   : > { %s705_s27 = smov 8  }
 0x180   : > { %561 = dma.vmem_to_hbm [thread:$0]  (%p761_p4), %s824_s29, 512, %s822_s4, %s826_s5, %s703_s25, %s704_s26, %s705_s27  }
 0x181 PF: > { %p567_p2 = scmp.ge.s32.totalorder %s699_s14, 2  ;;  %s404_s28 = sand.u32 1, %s679_s9  }
 0x182   : > { %s405_s30 = scalar_lea.sflag [#allocation3], %s404_s28 }
 0x183   : > { %p564_p3 = pnand %p567_p2, %p768_p8 }
 0x185   : > { %674 = dma.done.wait (!%p564_p3), %s405_s30, 512  }
 0x186   : > { %676 = vsyncadd (!%p564_p3), %s405_s30, 4294966784  ;;  %s15_s14 = sadd.s32 1, %s699_s14   ;;  %s879_s9 = smov %s683_s10 }
 0x187   : > { %p12_p5 = scmp.ge.s32.totalorder %s15_s14, 4   ;;  %s880_s10 = smov %s687_s11 }
 0x188   : > { %s881_s11 = smov %s774_s22  ;;  %s882_s12 = smov %s695_s13 }
 0x189   : > { %s883_s13 = smov %s885_s17  ;;  %14 = sbr.rel (!%p12_p5) target bundleno = 4 (0x4), region = 70 }
 0x190   :  { %410 = vsyncpa [#allocation3], 1 }
 0x191   :  { %412 = vsyncpa [#allocation3 + $0x1], 1 }

</bundles_post_ra>
